<compile_context>
chip_gen: v7x
topology: tpu7x:2x2x1
jax: 0.10.0
libtpu: 0.0.40
codegen_flags: <defaults>
</compile_context>

<pallas_src>
import functools

import jax
import jax.numpy as jnp
from jax.experimental import pallas as pl
from jax.experimental.pallas import tpu as pltpu

EPS = 1e-5  # nn.LayerNorm default


def block_kernel(x_ref, lnw_ref, lnb_ref, wqkv_ref,
                 xn_ref, q_ref, k_ref, v_ref, *, C, H, HD):
    # ---- LayerNorm over the last dim (f32 math, one-pass statistics) ----
    x = x_ref[0].astype(jnp.float32)                       # (TN, C)
    inv_c = jnp.float32(1.0 / C)
    s1 = jnp.sum(x, axis=-1, keepdims=True)                # independent XLU
    s2 = jnp.sum(x * x, axis=-1, keepdims=True)            # reductions
    mean = s1 * inv_c
    var = s2 * inv_c - mean * mean                         # biased var (== torch)
    inv = jax.lax.rsqrt(var + EPS)
    xn = (x - mean) * inv * lnw_ref[0].astype(jnp.float32) \
         + lnb_ref[0].astype(jnp.float32)
    xn_ref[0] = xn.astype(xn_ref.dtype)

    # ---- QKV projection on the MXU ----
    # Operands in the weight's dtype (bf16 weight -> bf16 MXU), f32 accumulation.
    w = wqkv_ref[...]                                      # (C, 3C), resident
    qkv = jnp.dot(xn.astype(w.dtype), w,
                  preferred_element_type=jnp.float32)      # (TN, 3C)

    # ---- head-permuted stores ----
    # q/k/v are written directly in their final (B, H, N, hd) layout so the
    # wrapper needs no XLA transpose afterwards.  Static per-head slices keep
    # the lowering trivial; the slice/shuffle work rides on XLU/VPU slack.
    # (For real workloads keep C and hd multiples of 128 so these stores are
    #  lane-dense; the tiny demo shape uses masked partial stores.)
    for h in range(H):
        q_ref[0, h] = qkv[:, h * HD:(h + 1) * HD].astype(q_ref.dtype)
        k_ref[0, h] = qkv[:, C + h * HD:C + (h + 1) * HD].astype(k_ref.dtype)
        v_ref[0, h] = qkv[:, 2 * C + h * HD:2 * C + (h + 1) * HD].astype(v_ref.dtype)


def _vmem_capacity_bytes():
    """Per-core VMEM capacity; conservative 64 MiB (v7x) if the query fails."""
    try:
        return int(pltpu.get_tpu_info().vmem_capacity_bytes)
    except Exception:  # capacity hint only -- never masks a kernel failure
        return 64 << 20


def _pick_tile_n(N, C, x_itemsize, w_itemsize, vmem_cap):
    """Largest sequence tile that fits ~85% of per-core VMEM after accounting
    for the resident (double-buffered) weight and the f32 intermediates."""
    # Double-buffered row tiles: x in + (xn, q, k, v) out  -> 2 * 5 * TN*C
    # f32 intermediates (x, xn, qkv) during compute        -> 5 * TN*C * 4
    per_row = 2 * 5 * C * x_itemsize + 5 * C * 4
    w_resident = 2 * 3 * C * C * w_itemsize                # double-buffered weight
    budget = int(0.85 * vmem_cap) - w_resident - (2 << 20)
    cap = max(8, budget // max(per_row, 1))
    if N <= min(cap, 1024):
        return N                                           # small sequence: one tile
    for tn in (1024, 512, 256, 128):                       # 256-aligned preferred
        if tn <= cap:
            return tn                                      # ragged edge rows are
    return int(max(8, (min(cap, 128) // 8) * 8))           # independent -> harmless


def block_forward(x, ln_w, ln_b, w_qkv_t, num_heads):
    """x: (B, N, C); ln_w/ln_b: (C,); w_qkv_t: (C, 3C) = torch qkv.weight.T.

    Pass w_qkv_t as bf16 to run the QKV projection on the bf16 MXU path
    (accumulation stays f32); LayerNorm is always computed in f32.
    Returns (x_n, q, k, v) with q/k/v of shape (B, num_heads, N, head_dim),
    written in that layout directly by the kernel (no post-kernel transpose).
    """
    B, N, C = x.shape
    hd = C // num_heads
    assert num_heads * hd == C

    x_itemsize = jnp.dtype(x.dtype).itemsize
    w_itemsize = jnp.dtype(w_qkv_t.dtype).itemsize
    vmem_cap = _vmem_capacity_bytes()
    TN = _pick_tile_n(N, C, x_itemsize, w_itemsize, vmem_cap)

    # Scoped-VMEM limit: actual need (+25% headroom), clamped to the queried
    # per-core capacity so v7x (64 MiB/TC) never gets an over-cap request.
    tile_bytes = 2 * 5 * TN * C * x_itemsize + 5 * TN * C * 4
    w_bytes = 2 * 3 * C * C * w_itemsize
    need = tile_bytes + w_bytes + (2 << 20)
    vmem_limit = int(min(max(int(1.25 * need), 32 << 20), int(0.9 * vmem_cap)))

    kernel = functools.partial(block_kernel, C=C, H=num_heads, HD=hd)
    grid = (B, pl.cdiv(N, TN))

    row_spec = pl.BlockSpec((1, TN, C), lambda b, n: (b, n, 0))
    head_spec = pl.BlockSpec((1, num_heads, TN, hd), lambda b, n: (b, 0, n, 0))
    vec_spec = pl.BlockSpec((1, C), lambda b, n: (0, 0))
    # Constant index_map: the weight stays resident in VMEM (the pipeliner
    # re-fetches only when the block index changes, i.e. never).
    w_spec = pl.BlockSpec((C, 3 * C), lambda b, n: (0, 0))

    out_shapes = (
        jax.ShapeDtypeStruct((B, N, C), x.dtype),
        jax.ShapeDtypeStruct((B, num_heads, N, hd), x.dtype),
        jax.ShapeDtypeStruct((B, num_heads, N, hd), x.dtype),
        jax.ShapeDtypeStruct((B, num_heads, N, hd), x.dtype),
    )

    xn, q, k, v = pl.pallas_call(
        kernel,
        out_shape=out_shapes,
        grid_spec=pltpu.PrefetchScalarGridSpec(
            num_scalar_prefetch=0,
            grid=grid,
            in_specs=[row_spec, vec_spec, vec_spec, w_spec],
            out_specs=[row_spec, head_spec, head_spec, head_spec],
        ),
        compiler_params=pltpu.CompilerParams(
            dimension_semantics=("parallel", "parallel"),
            vmem_limit_bytes=vmem_limit,
        ),
    )(x, ln_w.reshape(1, C), ln_b.reshape(1, C), w_qkv_t)

    return xn, q, k, v


def reference(x, ln_w, ln_b, w_qkv_t, num_heads):
    B, N, C = x.shape
    hd = C // num_heads
    mean = x.mean(-1, keepdims=True)
    var = ((x - mean) ** 2).mean(-1, keepdims=True)
    xn = (x - mean) / jnp.sqrt(var + EPS) * ln_w + ln_b
    qkv = (xn @ w_qkv_t).reshape(B, N, 3, num_heads, hd).transpose(2, 0, 3, 1, 4)
    return xn, qkv[0], qkv[1], qkv[2]


if __name__ == "__main__":
    B, N, C, H = 2, 8, 32, 4  # batch, seq, dim, num_heads (head_dim = 8)

    key = jax.random.PRNGKey(0)
    kx, kg, kb, kq = jax.random.split(key, 4)
    x = jax.random.normal(kx, (B, N, C), dtype=jnp.float32)
    ln_w = 1.0 + 0.1 * jax.random.normal(kg, (C,), dtype=jnp.float32)
    ln_b = 0.1 * jax.random.normal(kb, (C,), dtype=jnp.float32)
    # torch nn.Linear(dim, 3*dim).weight has shape (3C, C); transpose for x @ W^T.
    w_qkv_pt = jax.random.normal(kq, (3 * C, C), dtype=jnp.float32) / jnp.sqrt(C)
    w_qkv_t = w_qkv_pt.T  # (C, 3C)

    refs = reference(x, ln_w, ln_b, w_qkv_t, H)

    # f32 weight -> f32 matmul path: tight tolerance against the f32 reference.
    outs = jax.block_until_ready(block_forward(x, ln_w, ln_b, w_qkv_t, H))
    for o, r in zip(outs, refs):
        assert o.shape == r.shape, (o.shape, r.shape)
        assert jnp.allclose(o, r, atol=1e-4, rtol=1e-4), float(jnp.max(jnp.abs(o - r)))

    # bf16 weight -> bf16 MXU path with f32 accumulation: looser tolerance.
    outs_bf16 = jax.block_until_ready(
        block_forward(x, ln_w, ln_b, w_qkv_t.astype(jnp.bfloat16), H))
    for o, r in zip(outs_bf16, refs):
        assert o.shape == r.shape, (o.shape, r.shape)
        o32 = o.astype(jnp.float32)
        assert jnp.allclose(o32, r, atol=5e-2, rtol=5e-2), \
            float(jnp.max(jnp.abs(o32 - r)))

    print("KERNEL_OK")
</pallas_src>

<mosaic_0001>
module attributes {stable_mosaic.version = 11 : i64} {
  func.func @block_kernel(%arg0: i32, %arg1: i32, %arg2: memref<1x8x32xf32, #tpu.memory_space<vmem>>, %arg3: memref<1x32xf32, #tpu.memory_space<vmem>>, %arg4: memref<1x32xf32, #tpu.memory_space<vmem>>, %arg5: memref<32x96xf32, #tpu.memory_space<vmem>>, %arg6: memref<1x8x32xf32, #tpu.memory_space<vmem>>, %arg7: memref<1x4x8x8xf32, #tpu.memory_space<vmem>>, %arg8: memref<1x4x8x8xf32, #tpu.memory_space<vmem>>, %arg9: memref<1x4x8x8xf32, #tpu.memory_space<vmem>>) attributes {dimension_semantics = [#tpu.dimension_semantics<parallel>, #tpu.dimension_semantics<parallel>], iteration_bounds = array<i64: 2, 1>, scalar_prefetch = 0 : i64, scratch_operands = 0 : i64, tpu.core_type = #tpu.core_type<tc>, window_params = [{transform_indices = @transform_0, window_bounds = array<i64: 1, 8, 32>}, {pipeline_mode = #tpu.pipeline_mode<synchronous>, transform_indices = @transform_1, window_bounds = array<i64: 1, 32>}, {pipeline_mode = #tpu.pipeline_mode<synchronous>, transform_indices = @transform_2, window_bounds = array<i64: 1, 32>}, {pipeline_mode = #tpu.pipeline_mode<synchronous>, transform_indices = @transform_3, window_bounds = array<i64: 32, 96>}, {transform_indices = @transform_4, window_bounds = array<i64: 1, 8, 32>}, {transform_indices = @transform_5, window_bounds = array<i64: 1, 4, 8, 8>}, {transform_indices = @transform_6, window_bounds = array<i64: 1, 4, 8, 8>}, {transform_indices = @transform_7, window_bounds = array<i64: 1, 4, 8, 8>}]} {
    %c0 = arith.constant 0 : index
    %c0_0 = arith.constant 0 : index
    %c0_1 = arith.constant 0 : index
    %0 = vector.load %arg2[%c0, %c0_0, %c0_1] : memref<1x8x32xf32, #tpu.memory_space<vmem>>, vector<1x8x32xf32>
    %1 = vector.shape_cast %0 : vector<1x8x32xf32> to vector<8x32xf32>
    %cst = arith.constant dense<0.000000e+00> : vector<8xf32>
    %2 = vector.multi_reduction <add>, %1, %cst [1] : vector<8x32xf32> to vector<8xf32>
    %3 = vector.shape_cast %2 : vector<8xf32> to vector<8x1xf32>
    %4 = arith.mulf %1, %1 : vector<8x32xf32>
    %cst_2 = arith.constant dense<0.000000e+00> : vector<8xf32>
    %5 = vector.multi_reduction <add>, %4, %cst_2 [1] : vector<8x32xf32> to vector<8xf32>
    %6 = vector.shape_cast %5 : vector<8xf32> to vector<8x1xf32>
    %cst_3 = arith.constant 3.125000e-02 : f32
    %7 = vector.broadcast %cst_3 : f32 to vector<8x1xf32>
    %8 = arith.mulf %3, %7 : vector<8x1xf32>
    %cst_4 = arith.constant 3.125000e-02 : f32
    %9 = vector.broadcast %cst_4 : f32 to vector<8x1xf32>
    %10 = arith.mulf %6, %9 : vector<8x1xf32>
    %11 = arith.mulf %8, %8 : vector<8x1xf32>
    %12 = arith.subf %10, %11 : vector<8x1xf32>
    %cst_5 = arith.constant 9.99999974E-6 : f32
    %13 = vector.broadcast %cst_5 : f32 to vector<8x1xf32>
    %14 = arith.addf %12, %13 : vector<8x1xf32>
    %15 = math.rsqrt %14 : vector<8x1xf32>
    %16 = vector.broadcast %8 : vector<8x1xf32> to vector<8x32xf32>
    %17 = arith.subf %1, %16 : vector<8x32xf32>
    %18 = vector.broadcast %15 : vector<8x1xf32> to vector<8x32xf32>
    %19 = arith.mulf %17, %18 : vector<8x32xf32>
    %c0_6 = arith.constant 0 : index
    %c0_7 = arith.constant 0 : index
    %20 = vector.load %arg3[%c0_6, %c0_7] : memref<1x32xf32, #tpu.memory_space<vmem>>, vector<1x32xf32>
    %21 = vector.shape_cast %20 : vector<1x32xf32> to vector<32xf32>
    %22 = vector.shape_cast %21 : vector<32xf32> to vector<1x32xf32>
    %23 = vector.broadcast %22 : vector<1x32xf32> to vector<8x32xf32>
    %24 = arith.mulf %19, %23 : vector<8x32xf32>
    %c0_8 = arith.constant 0 : index
    %c0_9 = arith.constant 0 : index
    %25 = vector.load %arg4[%c0_8, %c0_9] : memref<1x32xf32, #tpu.memory_space<vmem>>, vector<1x32xf32>
    %26 = vector.shape_cast %25 : vector<1x32xf32> to vector<32xf32>
    %27 = vector.shape_cast %26 : vector<32xf32> to vector<1x32xf32>
    %28 = vector.broadcast %27 : vector<1x32xf32> to vector<8x32xf32>
    %29 = arith.addf %24, %28 : vector<8x32xf32>
    %c0_10 = arith.constant 0 : index
    %c0_11 = arith.constant 0 : index
    %c0_12 = arith.constant 0 : index
    %30 = vector.load %arg6[%c0_10, %c0_11, %c0_12] : memref<1x8x32xf32, #tpu.memory_space<vmem>>, vector<1x8x32xf32>
    %31 = vector.shape_cast %30 : vector<1x8x32xf32> to vector<8x32xf32>
    %32 = vector.shape_cast %29 : vector<8x32xf32> to vector<1x8x32xf32>
    tpu.vector_store %arg6[%c0_10, %c0_11, %c0_12], %32 {strides = array<i32>} : memref<1x8x32xf32, #tpu.memory_space<vmem>>, vector<1x8x32xf32>,
    %c0_13 = arith.constant 0 : index
    %c0_14 = arith.constant 0 : index
    %33 = vector.load %arg5[%c0_13, %c0_14] : memref<32x96xf32, #tpu.memory_space<vmem>>, vector<32x96xf32>
    %cst_15 = arith.constant dense<0.000000e+00> : vector<8x96xf32>
    %34 = tpu.matmul %29, %33, %cst_15 {dimension_numbers = #tpu.dot_dimension_numbers<[1], [0], [0], [1], [0, 0, 1, 1], [], []>} : vector<8x32xf32>, vector<32x96xf32>, vector<8x96xf32> -> vector<8x96xf32>
    %35 = vector.extract_strided_slice %34 {offsets = [0, 0], sizes = [8, 8], strides = [1, 1]} : vector<8x96xf32> to vector<8x8xf32>
    %c0_16 = arith.constant 0 : index
    %c0_17 = arith.constant 0 : index
    %c0_18 = arith.constant 0 : index
    %c0_19 = arith.constant 0 : index
    %36 = vector.load %arg7[%c0_16, %c0_17, %c0_18, %c0_19] : memref<1x4x8x8xf32, #tpu.memory_space<vmem>>, vector<1x1x8x8xf32>
    %37 = vector.shape_cast %36 : vector<1x1x8x8xf32> to vector<8x8xf32>
    %38 = vector.shape_cast %35 : vector<8x8xf32> to vector<1x1x8x8xf32>
    tpu.vector_store %arg7[%c0_16, %c0_17, %c0_18, %c0_19], %38 {strides = array<i32>} : memref<1x4x8x8xf32, #tpu.memory_space<vmem>>, vector<1x1x8x8xf32>,
    %39 = vector.extract_strided_slice %34 {offsets = [0, 32], sizes = [8, 8], strides = [1, 1]} : vector<8x96xf32> to vector<8x8xf32>
    %c0_20 = arith.constant 0 : index
    %c0_21 = arith.constant 0 : index
    %c0_22 = arith.constant 0 : index
    %c0_23 = arith.constant 0 : index
    %40 = vector.load %arg8[%c0_20, %c0_21, %c0_22, %c0_23] : memref<1x4x8x8xf32, #tpu.memory_space<vmem>>, vector<1x1x8x8xf32>
    %41 = vector.shape_cast %40 : vector<1x1x8x8xf32> to vector<8x8xf32>
    %42 = vector.shape_cast %39 : vector<8x8xf32> to vector<1x1x8x8xf32>
    tpu.vector_store %arg8[%c0_20, %c0_21, %c0_22, %c0_23], %42 {strides = array<i32>} : memref<1x4x8x8xf32, #tpu.memory_space<vmem>>, vector<1x1x8x8xf32>,
    %43 = vector.extract_strided_slice %34 {offsets = [0, 64], sizes = [8, 8], strides = [1, 1]} : vector<8x96xf32> to vector<8x8xf32>
    %c0_24 = arith.constant 0 : index
    %c0_25 = arith.constant 0 : index
    %c0_26 = arith.constant 0 : index
    %c0_27 = arith.constant 0 : index
    %44 = vector.load %arg9[%c0_24, %c0_25, %c0_26, %c0_27] : memref<1x4x8x8xf32, #tpu.memory_space<vmem>>, vector<1x1x8x8xf32>
    %45 = vector.shape_cast %44 : vector<1x1x8x8xf32> to vector<8x8xf32>
    %46 = vector.shape_cast %43 : vector<8x8xf32> to vector<1x1x8x8xf32>
    tpu.vector_store %arg9[%c0_24, %c0_25, %c0_26, %c0_27], %46 {strides = array<i32>} : memref<1x4x8x8xf32, #tpu.memory_space<vmem>>, vector<1x1x8x8xf32>,
    %47 = vector.extract_strided_slice %34 {offsets = [0, 8], sizes = [8, 8], strides = [1, 1]} : vector<8x96xf32> to vector<8x8xf32>
    %c0_28 = arith.constant 0 : index
    %c1 = arith.constant 1 : index
    %c0_29 = arith.constant 0 : index
    %c0_30 = arith.constant 0 : index
    %48 = vector.load %arg7[%c0_28, %c1, %c0_29, %c0_30] : memref<1x4x8x8xf32, #tpu.memory_space<vmem>>, vector<1x1x8x8xf32>
    %49 = vector.shape_cast %48 : vector<1x1x8x8xf32> to vector<8x8xf32>
    %50 = vector.shape_cast %47 : vector<8x8xf32> to vector<1x1x8x8xf32>
    tpu.vector_store %arg7[%c0_28, %c1, %c0_29, %c0_30], %50 {strides = array<i32>} : memref<1x4x8x8xf32, #tpu.memory_space<vmem>>, vector<1x1x8x8xf32>,
    %51 = vector.extract_strided_slice %34 {offsets = [0, 40], sizes = [8, 8], strides = [1, 1]} : vector<8x96xf32> to vector<8x8xf32>
    %c0_31 = arith.constant 0 : index
    %c1_32 = arith.constant 1 : index
    %c0_33 = arith.constant 0 : index
    %c0_34 = arith.constant 0 : index
    %52 = vector.load %arg8[%c0_31, %c1_32, %c0_33, %c0_34] : memref<1x4x8x8xf32, #tpu.memory_space<vmem>>, vector<1x1x8x8xf32>
    %53 = vector.shape_cast %52 : vector<1x1x8x8xf32> to vector<8x8xf32>
    %54 = vector.shape_cast %51 : vector<8x8xf32> to vector<1x1x8x8xf32>
    tpu.vector_store %arg8[%c0_31, %c1_32, %c0_33, %c0_34], %54 {strides = array<i32>} : memref<1x4x8x8xf32, #tpu.memory_space<vmem>>, vector<1x1x8x8xf32>,
    %55 = vector.extract_strided_slice %34 {offsets = [0, 72], sizes = [8, 8], strides = [1, 1]} : vector<8x96xf32> to vector<8x8xf32>
    %c0_35 = arith.constant 0 : index
    %c1_36 = arith.constant 1 : index
    %c0_37 = arith.constant 0 : index
    %c0_38 = arith.constant 0 : index
    %56 = vector.load %arg9[%c0_35, %c1_36, %c0_37, %c0_38] : memref<1x4x8x8xf32, #tpu.memory_space<vmem>>, vector<1x1x8x8xf32>
    %57 = vector.shape_cast %56 : vector<1x1x8x8xf32> to vector<8x8xf32>
    %58 = vector.shape_cast %55 : vector<8x8xf32> to vector<1x1x8x8xf32>
    tpu.vector_store %arg9[%c0_35, %c1_36, %c0_37, %c0_38], %58 {strides = array<i32>} : memref<1x4x8x8xf32, #tpu.memory_space<vmem>>, vector<1x1x8x8xf32>,
    %59 = vector.extract_strided_slice %34 {offsets = [0, 16], sizes = [8, 8], strides = [1, 1]} : vector<8x96xf32> to vector<8x8xf32>
    %c0_39 = arith.constant 0 : index
    %c2 = arith.constant 2 : index
    %c0_40 = arith.constant 0 : index
    %c0_41 = arith.constant 0 : index
    %60 = vector.load %arg7[%c0_39, %c2, %c0_40, %c0_41] : memref<1x4x8x8xf32, #tpu.memory_space<vmem>>, vector<1x1x8x8xf32>
    %61 = vector.shape_cast %60 : vector<1x1x8x8xf32> to vector<8x8xf32>
    %62 = vector.shape_cast %59 : vector<8x8xf32> to vector<1x1x8x8xf32>
    tpu.vector_store %arg7[%c0_39, %c2, %c0_40, %c0_41], %62 {strides = array<i32>} : memref<1x4x8x8xf32, #tpu.memory_space<vmem>>, vector<1x1x8x8xf32>,
    %63 = vector.extract_strided_slice %34 {offsets = [0, 48], sizes = [8, 8], strides = [1, 1]} : vector<8x96xf32> to vector<8x8xf32>
    %c0_42 = arith.constant 0 : index
    %c2_43 = arith.constant 2 : index
    %c0_44 = arith.constant 0 : index
    %c0_45 = arith.constant 0 : index
    %64 = vector.load %arg8[%c0_42, %c2_43, %c0_44, %c0_45] : memref<1x4x8x8xf32, #tpu.memory_space<vmem>>, vector<1x1x8x8xf32>
    %65 = vector.shape_cast %64 : vector<1x1x8x8xf32> to vector<8x8xf32>
    %66 = vector.shape_cast %63 : vector<8x8xf32> to vector<1x1x8x8xf32>
    tpu.vector_store %arg8[%c0_42, %c2_43, %c0_44, %c0_45], %66 {strides = array<i32>} : memref<1x4x8x8xf32, #tpu.memory_space<vmem>>, vector<1x1x8x8xf32>,
    %67 = vector.extract_strided_slice %34 {offsets = [0, 80], sizes = [8, 8], strides = [1, 1]} : vector<8x96xf32> to vector<8x8xf32>
    %c0_46 = arith.constant 0 : index
    %c2_47 = arith.constant 2 : index
    %c0_48 = arith.constant 0 : index
    %c0_49 = arith.constant 0 : index
    %68 = vector.load %arg9[%c0_46, %c2_47, %c0_48, %c0_49] : memref<1x4x8x8xf32, #tpu.memory_space<vmem>>, vector<1x1x8x8xf32>
    %69 = vector.shape_cast %68 : vector<1x1x8x8xf32> to vector<8x8xf32>
    %70 = vector.shape_cast %67 : vector<8x8xf32> to vector<1x1x8x8xf32>
    tpu.vector_store %arg9[%c0_46, %c2_47, %c0_48, %c0_49], %70 {strides = array<i32>} : memref<1x4x8x8xf32, #tpu.memory_space<vmem>>, vector<1x1x8x8xf32>,
    %71 = vector.extract_strided_slice %34 {offsets = [0, 24], sizes = [8, 8], strides = [1, 1]} : vector<8x96xf32> to vector<8x8xf32>
    %c0_50 = arith.constant 0 : index
    %c3 = arith.constant 3 : index
    %c0_51 = arith.constant 0 : index
    %c0_52 = arith.constant 0 : index
    %72 = vector.load %arg7[%c0_50, %c3, %c0_51, %c0_52] : memref<1x4x8x8xf32, #tpu.memory_space<vmem>>, vector<1x1x8x8xf32>
    %73 = vector.shape_cast %72 : vector<1x1x8x8xf32> to vector<8x8xf32>
    %74 = vector.shape_cast %71 : vector<8x8xf32> to vector<1x1x8x8xf32>
    tpu.vector_store %arg7[%c0_50, %c3, %c0_51, %c0_52], %74 {strides = array<i32>} : memref<1x4x8x8xf32, #tpu.memory_space<vmem>>, vector<1x1x8x8xf32>,
    %75 = vector.extract_strided_slice %34 {offsets = [0, 56], sizes = [8, 8], strides = [1, 1]} : vector<8x96xf32> to vector<8x8xf32>
    %c0_53 = arith.constant 0 : index
    %c3_54 = arith.constant 3 : index
    %c0_55 = arith.constant 0 : index
    %c0_56 = arith.constant 0 : index
    %76 = vector.load %arg8[%c0_53, %c3_54, %c0_55, %c0_56] : memref<1x4x8x8xf32, #tpu.memory_space<vmem>>, vector<1x1x8x8xf32>
    %77 = vector.shape_cast %76 : vector<1x1x8x8xf32> to vector<8x8xf32>
    %78 = vector.shape_cast %75 : vector<8x8xf32> to vector<1x1x8x8xf32>
    tpu.vector_store %arg8[%c0_53, %c3_54, %c0_55, %c0_56], %78 {strides = array<i32>} : memref<1x4x8x8xf32, #tpu.memory_space<vmem>>, vector<1x1x8x8xf32>,
    %79 = vector.extract_strided_slice %34 {offsets = [0, 88], sizes = [8, 8], strides = [1, 1]} : vector<8x96xf32> to vector<8x8xf32>
    %c0_57 = arith.constant 0 : index
    %c3_58 = arith.constant 3 : index
    %c0_59 = arith.constant 0 : index
    %c0_60 = arith.constant 0 : index
    %80 = vector.load %arg9[%c0_57, %c3_58, %c0_59, %c0_60] : memref<1x4x8x8xf32, #tpu.memory_space<vmem>>, vector<1x1x8x8xf32>
    %81 = vector.shape_cast %80 : vector<1x1x8x8xf32> to vector<8x8xf32>
    %82 = vector.shape_cast %79 : vector<8x8xf32> to vector<1x1x8x8xf32>
    tpu.vector_store %arg9[%c0_57, %c3_58, %c0_59, %c0_60], %82 {strides = array<i32>} : memref<1x4x8x8xf32, #tpu.memory_space<vmem>>, vector<1x1x8x8xf32>,
    return
  }
  func.func @transform_0(%arg0: i32, %arg1: i32) -> (i32, i32, i32) {
    %c0_i32 = arith.constant 0 : i32
    %c0_i32_0 = arith.constant 0 : i32
    return %arg0, %arg1, %c0_i32 : i32, i32, i32
  }
  func.func @transform_1(%arg0: i32, %arg1: i32) -> (i32, i32) {
    %c0_i32 = arith.constant 0 : i32
    %c0_i32_0 = arith.constant 0 : i32
    %c0_i32_1 = arith.constant 0 : i32
    return %c0_i32, %c0_i32_0 : i32, i32
  }
  func.func @transform_2(%arg0: i32, %arg1: i32) -> (i32, i32) {
    %c0_i32 = arith.constant 0 : i32
    %c0_i32_0 = arith.constant 0 : i32
    %c0_i32_1 = arith.constant 0 : i32
    return %c0_i32, %c0_i32_0 : i32, i32
  }
  func.func @transform_3(%arg0: i32, %arg1: i32) -> (i32, i32) {
    %c0_i32 = arith.constant 0 : i32
    %c0_i32_0 = arith.constant 0 : i32
    %c0_i32_1 = arith.constant 0 : i32
    return %c0_i32, %c0_i32_0 : i32, i32
  }
  func.func @transform_4(%arg0: i32, %arg1: i32) -> (i32, i32, i32) {
    %c0_i32 = arith.constant 0 : i32
    %c0_i32_0 = arith.constant 0 : i32
    return %arg0, %arg1, %c0_i32 : i32, i32, i32
  }
  func.func @transform_5(%arg0: i32, %arg1: i32) -> (i32, i32, i32, i32) {
    %c0_i32 = arith.constant 0 : i32
    %c0_i32_0 = arith.constant 0 : i32
    %c0_i32_1 = arith.constant 0 : i32
    return %arg0, %c0_i32, %arg1, %c0_i32_0 : i32, i32, i32, i32
  }
  func.func @transform_6(%arg0: i32, %arg1: i32) -> (i32, i32, i32, i32) {
    %c0_i32 = arith.constant 0 : i32
    %c0_i32_0 = arith.constant 0 : i32
    %c0_i32_1 = arith.constant 0 : i32
    return %arg0, %c0_i32, %arg1, %c0_i32_0 : i32, i32, i32, i32
  }
  func.func @transform_7(%arg0: i32, %arg1: i32) -> (i32, i32, i32, i32) {
    %c0_i32 = arith.constant 0 : i32
    %c0_i32_0 = arith.constant 0 : i32
    %c0_i32_1 = arith.constant 0 : i32
    return %arg0, %c0_i32, %arg1, %c0_i32_0 : i32, i32, i32, i32
  }
}

</mosaic_0001>

<bundles_post_ra>
// kernel: tpu_custom_call.1
= control target key start
LH: loop header
LB: loop body
LE: loop exit
PB: predicated region body
PF: predicated region fallthrough
CT: control target
= control target key end

     0   :  { %s1639_s0 = inlined_call_operand.hbm [shape: f32[2,8,32], index: 0, kind: input, shape index: {}]   ;;  %s1640_s1 = inlined_call_operand.vmem [shape: f32[1,32], index: 1, kind: input, shape index: {}]   ;;  %s1641_s2 = inlined_call_operand.vmem [shape: f32[1,32], index: 2, kind: input, shape index: {}]   ;;  %s1642_s3 = inlined_call_operand.hbm [shape: f32[32,96], index: 3, kind: input, shape index: {}]   ;;  %s1643_s4 = inlined_call_operand.hbm [shape: f32[2,8,32], index: 4, kind: output, shape index: {0}]   ;;  %s1644_s5 = inlined_call_operand.hbm [shape: f32[2,4,8,8], index: 5, kind: output, shape index: {1}]   ;;  %s1645_s6 = inlined_call_operand.hbm [shape: f32[2,4,8,8], index: 6, kind: output, shape index: {2}]   ;;  %s1646_s7 = inlined_call_operand.hbm [shape: f32[2,4,8,8], index: 7, kind: output, shape index: {3}]  }
   0x1   :  { %1652 = sst [smem:[#allocation19_spill]] %s1639_s0 }
   0x2   :  { %1653 = sst [smem:[#allocation20_spill]] %s1640_s1 }
   0x3   :  { %1654 = sst [smem:[#allocation21_spill]] %s1642_s3 }
   0x4   :  { %13 = vsyncpa [#allocation3], 0 }
   0x5   :  { %15 = vsyncpa [#allocation3 + $0x1], 0 }
   0x6   :  { %16 = vsyncpa [#allocation6], 0 }
   0x7   :  { %17 = vsyncpa [#allocation4], 0 }
   0x8   :  { %19 = vsyncpa [#allocation4 + $0x1], 0 }
   0x9   :  { %20 = vsyncpa [#allocation9], 0 }
   0xa   :  { %22 = vsyncpa [#allocation9 + $0x1], 0 }
   0xb   :  { %23 = vsyncpa [#allocation12], 0 }
   0xc   :  { %25 = vsyncpa [#allocation12 + $0x1], 0  ;;  %s1271_s24 = smov 0   ;;  %s1273_s25 = smov 0  }
   0xd   :  { %s1275_s26 = smov 0   ;;  %s1277_s27 = smov 0  }
   0xe   :  { %s1279_s28 = smov 0   ;;  %s1281_s29 = smov 0  }
   0xf LB: > { %s1302_s30 = sadd.s32 4294967295, %s1205_s29   ;;  %s1650_s8 = sadd.s32 4294967294, %s1205_s29   ;;  %s1205_s29 = sphi %s1281_s29, %s31_s29   ;;  %s1201_s28 = sphi %s1279_s28, %s1679_s28   ;;  %s1197_s27 = sphi %s1277_s27, %s1678_s27   ;;  %s1193_s26 = sphi %s1275_s26, %s1677_s26   ;;  %s1189_s25 = sphi %s1273_s25, %s1676_s25   ;;  %s1185_s24 = sphi %s1271_s24, %s1675_s24  }
  0x10   : > { %p65_p0 = scmp.ne.s32.totalorder %s1189_s25, %s1185_s24  ;;  %p1647_p1 = scmp.eq.s32.totalorder %s1302_s30, 0 }
  0x11   : > { %p160_p3 = scmp.eq.s32.totalorder %s1650_s8, 1  ;;  %p799_p5 = scmp.ge.s32.totalorder %s1205_s29, 1 }
  0x12   : > { %p1313_p4 = por %p1647_p1, %p65_p0  ;;  %p251_p7 = scmp.lt.s32.totalorder %s1205_s29, 3 }
  0x13   : > { %p1318_p6 = por %p160_p3, %p65_p0  ;;  %s1207_s12 = smov [#allocation5]  }
  0x14   : > { %s1655_s9 = scalar_select %p1313_p4, 1, 0 }
  0x15   : > { %s1656_s10 = scalar_select %p1318_p6, 1, 0 }
  0x16   : > { %p1323_p8 = pnand %p799_p5, %p251_p7  ;;  %s269_s13 = sshll.u32 %s1207_s12, 4  ;;  %s270_s13 = int_to_ptr.vmem [resolvable:$true] %s269_s13 }
  0x17   : > { %s43_s15 = sadd.s32 1, %s1201_s28  ;;  %s1659_s3 = sld [smem:[#allocation21_spill]] }
  0x18   : > { %s1657_s11 = scalar_select %p1323_p8, 1, 0 }
  0x19   : > { %p875_p9 = pneg %p1323_p8 }
  0x1b   : > { %p1332_p11 = pnand %p875_p9, %p1647_p1 }
  0x1d   : > { %s969_s18 = scalar_lea.hbm %s1659_s3, 512  ;;  %p971_p13 = pneg %p1332_p11 }
  0x1e   : > { %p970_p12 = scmp.ne.s32.totalorder %s1659_s3, %s969_s18  ;;  %p976_p5 = scmp.lt.u32.totalorder %s969_s18, %s1659_s3 }
  0x20   : > { %p972_p0 = pnand %p971_p13, %p970_p12 }
  0x22   : > { %p973_p3 = pneg %p972_p0 }
  0x24   : > { %p978_p7 = pnand %p976_p5, %p973_p3 }
  0x26   : > { %981 = shalt.err (!%p978_p7)
}
  0x27   : > { %s982_s23 = scalar_lea.vmem %s270_s13, 512  ;;  %p990_p2 = scmp.lt.s32.totalorder %s270_s13, %s270_s13 }
  0x28   : > { %p983_p9 = scmp.ne.s32.totalorder %s270_s13, %s982_s23  ;;  %p991_p6 = scmp.lt.s32.totalorder %s982_s23, %s982_s23 }
  0x2a   : > { %p985_p10 = pnand %p983_p9, %p971_p13  ;;  %p992_p4 = por %p991_p6, %p990_p2 }
  0x2c   : > { %p986_p1 = pneg %p985_p10 }
  0x2e   : > { %p993_p8 = pnand %p992_p4, %p986_p1 }
  0x30   : > { %996 = shalt.err (!%p993_p8)
}
  0x31   : > { %s1208_s12 = smov 128   ;;  %s1209_s16 = smov 8  }
  0x32   : > { %878 = dma.hbm_to_vmem [thread:$0]  (!%p1332_p11), %s1659_s3, 512, %s270_s13, [#allocation6], %s1208_s12, %s1208_s12, %s1209_s16  }
  0x33   : > { %p45_p1 = scmp.ge.s32.totalorder %s43_s15, 2  ;;  %s52_s19 = sadd.s32 1, %s1193_s26 }
  0x34   : > { %p59_p2 = scmp.ne.s32.totalorder %s1193_s26, %s1189_s25  ;;  %p60_p4 = scmp.eq.s32.totalorder %s1205_s29, 0 }
  0x35   : > { %s1681_s15 = smov (%p45_p1, %s43_s15), 0  ;;  %p1662_p8 = scmp.eq.s32.totalorder %s1302_s30, 1 }
  0x36   : > { %1660 = sst [smem:[#allocation18_spill]] %s1681_s15  ;;  %p1359_p6 = por %p60_p4, %p59_p2 }
  0x37   : > { %p1365_p10 = por %p1662_p8, %p59_p2  ;;  %s47_s14 = ssub.s32 %s1201_s28, %s1681_s15 }
  0x38   : > { %p897_p12 = scmp.lt.s32.totalorder %s1205_s29, 2  ;;  %p50_p11 = scmp.eq.s32.totalorder %s47_s14, 0 }
  0x39   : > { %s283_s13 = sand.u32 1, %s1193_s26   ;;  %s803_s12 = sshll.u32 %s1201_s28, 7 }
  0x3a   : > { %s802_s22 = sshll.u32 %s283_s13, 3  ;;  %s1664_s0 = sld [smem:[#allocation19_spill]] }
  0x3b   : > { %s1374_s23 = scalar_select %p50_p11, %s1193_s26, %s52_s19  }
  0x3c   : > { %s287_s8 = scalar_lea.vmem [#allocation2], %s802_s22  ;;  %p1386_p13 = pnand %p897_p12, %p1359_p6 }
  0x3d   : > { %s295_s3 = sshll.u32 %s287_s8, 4  ;;  %s284_s19 = scalar_lea.sflag [#allocation3], %s283_s13  ;;  %s1382_s3 = int_to_ptr.vmem [resolvable:$true] %s295_s3 }
  0x3e   : > { %p999_p3 = pneg %p1386_p13 }
  0x40   : > { %s1380_s18 = scalar_lea.hbm %s1664_s0, %s803_s12  ;;  %s1002_s12 = scalar_lea.hbm %s1664_s0, 256 }
  0x41   : > { %s997_s15 = scalar_lea.hbm %s1380_s18, 128  ;;  %p1003_p9 = scmp.lt.u32.totalorder %s1380_s18, %s1664_s0 }
  0x42   : > { %p998_p0 = scmp.ne.s32.totalorder %s1380_s18, %s997_s15  ;;  %p1004_p1 = scmp.lt.u32.totalorder %s1002_s12, %s997_s15 }
  0x43   : > { %p1006_p4 = scmp.lt.u32.totalorder %s997_s15, %s1380_s18 }
  0x44   : > { %p1000_p5 = pnand %p999_p3, %p998_p0  ;;  %p1005_p2 = por %p1004_p1, %p1003_p9 }
  0x46   : > { %p1001_p7 = pneg %p1000_p5  ;;  %p1007_p6 = por %p1006_p4, %p1005_p2 }
  0x48   : > { %p1008_p8 = pnand %p1007_p6, %p1001_p7 }
  0x4a   : > { %1011 = shalt.err (!%p1008_p8)
}
  0x4b   : > { %s1012_s13 = scalar_lea.vmem %s1382_s3, 128  ;;  %s1210_s17 = smov [#allocation2]  }
  0x4c   : > { %p1013_p12 = scmp.ne.s32.totalorder %s1382_s3, %s1012_s13  ;;  %s1017_s22 = sshll.u32 %s1210_s17, 4  ;;  %s1018_s22 = int_to_ptr.vmem [resolvable:$false] %s1017_s22 }
  0x4d   : > { %s1019_s8 = scalar_lea.vmem %s1018_s22, 256  ;;  %p1020_p5 = scmp.lt.s32.totalorder %s1382_s3, %s1018_s22 }
  0x4e   : > { %p1015_p11 = pnand %p1013_p12, %p999_p3  ;;  %p1021_p9 = scmp.lt.s32.totalorder %s1019_s8, %s1012_s13 }
  0x50   : > { %p1016_p0 = pneg %p1015_p11  ;;  %p1022_p1 = por %p1021_p9, %p1020_p5 }
  0x52   : > { %p1023_p2 = pnand %p1022_p1, %p1016_p0 }
  0x54   : > { %1026 = shalt.err (!%p1023_p2)
}
  0x55   : > { %882 = dma.hbm_to_vmem [thread:$0]  (!%p1386_p13), %s1380_s18, 128, %s1382_s3, %s284_s19  }
  0x56   : > { %p1666_p7 = scmp.ne.s32.totalorder %s1657_s11, 0 }
  0x57   : > { %s1418_s15 = sand.u32 (!%p1666_p7), 1, %s1189_s25   ;;  %p1667_p3 = scmp.ne.s32.totalorder (!%p1666_p7), %s1655_s9, 0 }
  0x58   : > { %304 = sbr.rel (%p1666_p7) target bundleno = 670 (0x29e), region = 36  ;;  %s805_s12 = sshll.u32 (!%p1666_p7), %s1418_s15, 3 }
  0x59   : > { %s307_s20 = scalar_lea.sflag (!%p1666_p7), [#allocation3], %s1418_s15  ;;  %s310_s16 = scalar_lea.vmem (!%p1666_p7), [#allocation2], %s805_s12 }
  0x5f   : > { %1164 = dma.done.wait (%p1667_p3), %s307_s20, 128  }
  0x60   : > { %1166 = vsyncadd (%p1667_p3), %s307_s20, 4294967168  ;;  %p1668_p13 = scmp.eq.s32.totalorder %s1302_s30, 0 }
  0x62   : > { %1168 = dma.done.wait (%p1668_p13), [#allocation6], 512   ;;  %p1669_p4 = pmov %p1668_p13 }
  0x63   : > { %vm361_vm0 = vcmask 261120   ;;  %v360_v0 = vld [vmem:[%s310_s16] sm:$0xff]  ;;  %v394_v4 = vld [vmem:[#allocation5] sm:$0xff]  ;;  %v395_v5 = vld [vmem:[#allocation5 + $0x8] sm:$0xff]  ;;  %v1211_v7 = vmov 0.0|0.0   ;;  %vm1212_vm1 = vmmov 0  }
  0x64   : > { %1170 = vsyncadd (%p1669_p4), [#allocation6], 4294966784  ;;  %v362_v1 = vsel %vm361_vm0, %v360_v0, 0.0  ;;  %v365_v2 = vmul.f32 %v360_v0, %v360_v0  ;;  %v396_v6 = vld [vmem:[#allocation5 + $0x10] sm:$0xff]  ;;  %855 = vmatprep.subr.bf16.mxu0 %v1211_v7  ;;  %v856_v8 = vpack.c.bf16 %v395_v5, %v394_v4  ;;  %v397_v9 = vld [vmem:[#allocation5 + $0x18] sm:$0xff]  ;;  %v1213_v10 = vmov 0.0  }
  0x65   : > { %363 = vadd.xlane.f32.xlu0 %v362_v1  ;;  %852 = vmatprep.mubr.msk.f32.mxu0 %vm1212_vm1, %v1213_v10  ;;  %v859_v11 = vpack.c.bf16 %v397_v9, %v396_v6  ;;  %s1670_s1 = sld [smem:[#allocation20_spill]]  ;;  %v812_v23 = vld [vmem:[%s1641_s2] ss:$0 sm:$0xff]  ;;  %s338_s14 = scalar_lea.vmem [#allocation7], %s805_s12  ;;  %vm471_vm2 = vcmask 64512  }
  0x66   : > { %v366_v3 = vsel %vm361_vm0, %v365_v2, 0.0  ;;  %857 = vmatpush3.bf16.msra.mxu0 %v856_v8  ;;  %s1445_s19 = sshll.u32 %s1418_s15, 5  ;;  %s1214_s13 = smov 104  }
  0x67   : > { %858 = vmatprep.subr.bf16.mxu0 %v1211_v7  ;;  %s1215_s17 = smov 120   ;;  %s1448_s22 = scalar_lea.vmem [#allocation8], %s1445_s19 }
  0x68   : > { %s1216_s8 = smov 72   ;;  %s1217_s12 = smov 112  }
  0x69   : > { %367 = vadd.xlane.f32.xlu0 %v366_v3  ;;  %s1218_s20 = smov 96   ;;  %s1219_s16 = smov 64  }
  0x6a   : > { %860 = vmatpush3.bf16.msra.mxu0 %v859_v11  ;;  %s1220_s3 = smov 88   ;;  %s1221_s9 = smov 56  }
  0x6b   : > { %v811_v21 = vld [vmem:[%s1670_s1] ss:$0 sm:$0xff]  ;;  %s827_s11 = sshll.u32 %s1197_s27, 7  ;;  %s557_s18 = sshll.u32 %s338_s14, 4  ;;  %s558_s18 = int_to_ptr.vmem [resolvable:$true] %s557_s18 }
  0x6c   : > { %s1456_s0 = scalar_lea.hbm %s1643_s4, %s827_s11  ;;  %s1027_s1 = scalar_lea.vmem %s558_s18, 128 }
  0x6d   : > { %p1028_p6 = scmp.ne.s32.totalorder %s558_s18, %s1027_s1 }
  0x6f   : > { %p1029_p8 = pnand %p1028_p6, %p1365_p10 }
  0x71   : > { %p1030_p12 = pneg %p1029_p8 }
  0xf2   : > { %v364_v12 = vpop.xlane.xlu0 %363 }
  0xf3   : > { %v369_v13 = vmul.f32 0.03125, %v364_v12 }
  0xf5   : > { %v371_v15 = vmul.f32 %v369_v13, %v369_v13  ;;  %v375_v19 = vsub.f32 %v360_v0, %v369_v13 }
  0xf6   : > { %v368_v14 = vpop.xlane.xlu0 %367 }
  0xf7   : > { %v370_v16 = vmul.f32 0.03125, %v368_v14 }
  0xf9   : > { %v372_v17 = vsub.f32 %v370_v16, %v371_v15 }
  0xfb   : > { %v373_v18 = vadd.f32 1e-05, %v372_v17 }
  0xfd   : > { %967 = vrsqrt.f32 %v373_v18 }
 0x107   : > { %v968_v20 = vpop.eup %967 }
 0x108   : > { %v376_v22 = vmul.f32 %v968_v20, %v375_v19 }
 0x10a   : > { %v384_v24 = vmul.f32 %v811_v21, %v376_v22 }
 0x10c   : > { %v392_v25 = vadd.f32 %v812_v23, %v384_v24 }
 0x10e   : > { %853 = vmatmul.mubr.msk.f32.vlgmr.msra.gmra.mrb[0].mxu0 %vm361_vm0, %v392_v25  ;;  %393 = vst.msk [vmem:[%s338_s14] sm:$0xff] %vm361_vm0, %v392_v25 }
 0x1e1   : > { %v467_v26 = vpop.f32.mrb[0].mxu0 }
 0x1e2   : > { %512 = vrot.lane.b32.xlu0 %v467_v26, %s1214_s13  ;;  %482 = vrot.lane.b32.xlu1 %v467_v26, %s1215_s17  ;;  %v854_v27 = vpop.f32.mrb[1].mxu0  ;;  %472 = vst.msk [vmem:[%s1448_s22] sm:$0xff] %vm471_vm2, %v467_v26 }
 0x1e6   : > { %517 = vrot.lane.b32.xlu0 %v467_v26, %s1216_s8  ;;  %497 = vrot.lane.b32.xlu1 %v467_v26, %s1217_s12  ;;  %s528_s8 = scalar_lea.sflag [#allocation4], %s1418_s15  ;;  %s1222_s12 = smov [#allocation7]  }
 0x1ea   : > { %474 = vrot.lane.b32.xlu1 %v467_v26, %s1218_s20  ;;  %s1031_s20 = sshll.u32 %s1222_s12, 4  ;;  %s1032_s20 = int_to_ptr.vmem [resolvable:$false] %s1031_s20 }
 0x1eb   : > { %p1034_p11 = scmp.lt.s32.totalorder %s558_s18, %s1032_s20 }
 0x1ee   : > { %478 = vrot.lane.b32.xlu1 %v467_v26, %s1219_s16  ;;  %s1033_s16 = scalar_lea.vmem %s1032_s20, 256 }
 0x1ef   : > { %p1035_p0 = scmp.lt.s32.totalorder %s1033_s16, %s1027_s1 }
 0x1f1   : > { %p1036_p5 = por %p1035_p0, %p1034_p11 }
 0x1f2   : > { %487 = vrot.lane.b32.xlu1 %v467_v26, %s1220_s3 }
 0x1f3   : > { %p1037_p9 = pnand %p1036_p5, %p1030_p12 }
 0x1f6   : > { %492 = vrot.lane.b32.xlu1 %v467_v26, %s1221_s9 }
 0x1f7   : > { %1040 = shalt.err (!%p1037_p9)
}
 0x1f8   : > { %s1041_s14 = scalar_lea.hbm %s1456_s0, 128  ;;  %s1045_s11 = scalar_lea.hbm %s1643_s4, 256 }
 0x1f9   : > { %p1042_p1 = scmp.ne.s32.totalorder %s1456_s0, %s1041_s14  ;;  %p1046_p3 = scmp.lt.u32.totalorder %s1456_s0, %s1643_s4 }
 0x1fa   : > { %p1047_p13 = scmp.lt.u32.totalorder %s1045_s11, %s1041_s14  ;;  %p1049_p6 = scmp.lt.u32.totalorder %s1041_s14, %s1456_s0 }
 0x1fb   : > { %p1043_p2 = pnand %p1042_p1, %p1365_p10 }
 0x1fc   : > { %p1048_p4 = por %p1047_p13, %p1046_p3 }
 0x1fd   : > { %p1044_p7 = pneg %p1043_p2 }
 0x1fe   : > { %p1050_p8 = por %p1049_p6, %p1048_p4 }
 0x200   : > { %p1051_p12 = pnand %p1050_p8, %p1044_p7 }
 0x202   : > { %1054 = shalt.err (!%p1051_p12)
}
 0x203   : > { %867 = dma.vmem_to_hbm [thread:$0]  (%p1365_p10), %s558_s18, 128, %s1456_s0, %s528_s8  }
 0x204   : > { %s1223_s1 = smov 80   ;;  %s1224_s12 = smov 48  }
 0x205   : > { %502 = vrot.lane.b32.xlu1 %v467_v26, %s1223_s1  ;;  %s1225_s20 = smov 40   ;;  %s571_s16 = sshll.u32 %s1448_s22, 4  ;;  %s1481_s16 = int_to_ptr.vmem [resolvable:$true] %s571_s16 }
 0x206   : > { %s532_s14 = sand.u32 1, %s1302_s30   ;;  %s1479_s3 = sshll.u32 %s1197_s27, 9 }
 0x207   : > { %s1491_s8 = scalar_lea.hbm %s1644_s5, %s1479_s3  ;;  %s1494_s27 = scalar_lea.vmem [#allocation10], %s1445_s19 }
 0x208   : > { %s1500_s30 = scalar_lea.sflag [#allocation9], %s532_s14  ;;  %s1055_s9 = scalar_lea.vmem %s1481_s16, 512 }
 0x209   : > { %507 = vrot.lane.b32.xlu1 %v467_v26, %s1224_s12  ;;  %p1056_p11 = scmp.ne.s32.totalorder %s1481_s16, %s1055_s9  ;;  %s1226_s11 = smov [#allocation8]  }
 0x20a   : > { %s1059_s13 = sshll.u32 %s1226_s11, 4  ;;  %s1060_s13 = int_to_ptr.vmem [resolvable:$false] %s1059_s13 }
 0x20b   : > { %p1057_p0 = pnand %p1056_p11, %p1365_p10  ;;  %s1061_s17 = scalar_lea.vmem %s1060_s13, 1024 }
 0x20c   : > { %p1062_p9 = scmp.lt.s32.totalorder %s1481_s16, %s1060_s13  ;;  %p1063_p1 = scmp.lt.s32.totalorder %s1061_s17, %s1055_s9 }
 0x20d   : > { %522 = vrot.lane.b32.xlu1 %v467_v26, %s1225_s20  ;;  %p1058_p5 = pneg %p1057_p0 }
 0x20e   : > { %p1064_p2 = por %p1063_p1, %p1062_p9 }
 0x210   : > { %p1065_p7 = pnand %p1064_p2, %p1058_p5 }
 0x254   : > { %v513_v28 = vpop.permute.xlu0 %512  ;;  %v483_v29 = vpop.permute.xlu1 %482 }
 0x255   : > { %820 = vst.msk [vmem:[%s1448_s22 + $0x18] sm:$0xff] %vm471_vm2, %v513_v28  ;;  %814 = vst.msk [vmem:[%s1448_s22 + $0x8] sm:$0xff] %vm471_vm2, %v483_v29 }
 0x258   : > { %v518_v30 = vpop.permute.xlu0 %517  ;;  %v498_v31 = vpop.permute.xlu1 %497 }
 0x259   : > { %821 = vst.msk [vmem:[%s1494_s27 + $0x18] sm:$0xff] %vm471_vm2, %v518_v30  ;;  %817 = vst.msk [vmem:[%s1448_s22 + $0x10] sm:$0xff] %vm471_vm2, %v498_v31 }
 0x25a   : > { %1068 = shalt.err (!%p1065_p7)
}
 0x25b   : > { %s1069_s22 = scalar_lea.hbm %s1491_s8, 512  ;;  %s1073_s20 = scalar_lea.hbm %s1644_s5, 1024 }
 0x25c   : > { %p1070_p3 = scmp.ne.s32.totalorder %s1491_s8, %s1069_s22  ;;  %p1074_p6 = scmp.lt.u32.totalorder %s1491_s8, %s1644_s5 }
 0x25d   : > { %p1075_p8 = scmp.lt.u32.totalorder %s1073_s20, %s1069_s22  ;;  %p1077_p11 = scmp.lt.u32.totalorder %s1069_s22, %s1491_s8 }
 0x25e   : > { %p1071_p13 = pnand %p1070_p3, %p1365_p10 }
 0x25f   : > { %p1076_p12 = por %p1075_p8, %p1074_p6 }
 0x260   : > { %p1072_p4 = pneg %p1071_p13 }
 0x261   : > { %p1078_p0 = por %p1077_p11, %p1076_p12 }
 0x263   : > { %p1079_p5 = pnand %p1078_p0, %p1072_p4 }
 0x265   : > { %1082 = shalt.err (!%p1079_p5)
}
 0x266   : > { %s1227_s18 = smov 128   ;;  %s1228_s9 = smov 8   ;;  %v475_v32 = vpop.permute.xlu1 %474 }
 0x267   : > { %868 = dma.vmem_to_hbm [thread:$0]  (%p1365_p10), %s1481_s16, 512, %s1491_s8, %s1500_s30, %s1227_s18, %s1227_s18, %s1228_s9  }
 0x268   : > { %477 = vst.msk [vmem:[%s1494_s27] sm:$0xff] %vm471_vm2, %v475_v32  ;;  %s1530_s11 = scalar_lea.vmem [#allocation11], %s1445_s19  ;;  %s588_s13 = sshll.u32 %s1494_s27, 4  ;;  %s1539_s13 = int_to_ptr.vmem [resolvable:$true] %s588_s13 }
 0x269   : > { %s1545_s19 = scalar_lea.hbm %s1645_s6, %s1479_s3  ;;  %s1083_s17 = scalar_lea.vmem %s1539_s13, 512 }
 0x26a   : > { %v479_v33 = vpop.permute.xlu1 %478  ;;  %p1084_p9 = scmp.ne.s32.totalorder %s1539_s13, %s1083_s17  ;;  %s1229_s22 = smov [#allocation10]  }
 0x26b   : > { %481 = vst.msk [vmem:[%s1530_s11] sm:$0xff] %vm471_vm2, %v479_v33  ;;  %s1087_s1 = sshll.u32 %s1229_s22, 4  ;;  %s1088_s1 = int_to_ptr.vmem [resolvable:$false] %s1087_s1 }
 0x26c   : > { %p1085_p1 = pnand %p1084_p9, %p1365_p10  ;;  %s1089_s12 = scalar_lea.vmem %s1088_s1, 1024 }
 0x26d   : > { %p1090_p7 = scmp.lt.s32.totalorder %s1539_s13, %s1088_s1  ;;  %p1091_p3 = scmp.lt.s32.totalorder %s1089_s12, %s1083_s17 }
 0x26e   : > { %v488_v34 = vpop.permute.xlu1 %487  ;;  %p1086_p2 = pneg %p1085_p1 }
 0x26f   : > { %815 = vst.msk [vmem:[%s1494_s27 + $0x8] sm:$0xff] %vm471_vm2, %v488_v34  ;;  %p1092_p13 = por %p1091_p3, %p1090_p7 }
 0x271   : > { %p1093_p4 = pnand %p1092_p13, %p1086_p2 }
 0x272   : > { %v493_v35 = vpop.permute.xlu1 %492 }
 0x273   : > { %816 = vst.msk [vmem:[%s1530_s11 + $0x8] sm:$0xff] %vm471_vm2, %v493_v35 }
 0x277   : > { %v503_v36 = vpop.permute.xlu1 %502 }
 0x278   : > { %818 = vst.msk [vmem:[%s1494_s27 + $0x10] sm:$0xff] %vm471_vm2, %v503_v36 }
 0x279   : > { %1096 = shalt.err (!%p1093_p4)
}
 0x27a   : > { %s1097_s27 = scalar_lea.hbm %s1545_s19, 512  ;;  %s1101_s0 = scalar_lea.hbm %s1645_s6, 1024 }
 0x27b   : > { %p1098_p6 = scmp.ne.s32.totalorder %s1545_s19, %s1097_s27  ;;  %p1102_p11 = scmp.lt.u32.totalorder %s1545_s19, %s1645_s6 }
 0x27c   : > { %p1103_p0 = scmp.lt.u32.totalorder %s1101_s0, %s1097_s27  ;;  %p1105_p9 = scmp.lt.u32.totalorder %s1097_s27, %s1545_s19 }
 0x27d   : > { %p1099_p8 = pnand %p1098_p6, %p1365_p10 }
 0x27e   : > { %p1104_p5 = por %p1103_p0, %p1102_p11 }
 0x27f   : > { %p1100_p12 = pneg %p1099_p8 }
 0x280   : > { %p1106_p1 = por %p1105_p9, %p1104_p5 }
 0x282   : > { %p1107_p2 = pnand %p1106_p1, %p1100_p12 }
 0x284   : > { %1110 = shalt.err (!%p1107_p2)
}
 0x285   : > { %869 = dma.vmem_to_hbm [thread:$0]  (%p1365_p10), %s1539_s13, 512, %s1545_s19, %s1500_s30, %s1227_s18, %s1227_s18, %s1228_s9   ;;  %v508_v37 = vpop.permute.xlu1 %507 }
 0x286   : > { %s605_s17 = sshll.u32 %s1530_s11, 4  ;;  %819 = vst.msk [vmem:[%s1530_s11 + $0x10] sm:$0xff] %vm471_vm2, %v508_v37  ;;  %s1583_s12 = scalar_lea.hbm %s1646_s7, %s1479_s3  ;;  %s1577_s17 = int_to_ptr.vmem [resolvable:$true] %s605_s17 }
 0x287   : > { %s543_s27 = scalar_lea.sflag [#allocation12], %s1418_s15  ;;  %s1111_s20 = scalar_lea.vmem %s1577_s17, 512 }
 0x288   : > { %p1112_p7 = scmp.ne.s32.totalorder %s1577_s17, %s1111_s20  ;;  %s1230_s30 = smov [#allocation11]  }
 0x289   : > { %v523_v38 = vpop.permute.xlu1 %522  ;;  %s1115_s13 = sshll.u32 %s1230_s30, 4  ;;  %s1116_s13 = int_to_ptr.vmem [resolvable:$false] %s1115_s13 }
 0x28a   : > { %822 = vst.msk [vmem:[%s1530_s11 + $0x18] sm:$0xff] %vm471_vm2, %v523_v38  ;;  %p1113_p3 = pnand %p1112_p7, %p1365_p10  ;;  %s1117_s19 = scalar_lea.vmem %s1116_s13, 1024 }
 0x28b   : > { %p1118_p4 = scmp.lt.s32.totalorder %s1577_s17, %s1116_s13  ;;  %p1119_p6 = scmp.lt.s32.totalorder %s1117_s19, %s1111_s20 }
 0x28c   : > { %p1114_p13 = pneg %p1113_p3 }
 0x28d   : > { %p1120_p8 = por %p1119_p6, %p1118_p4 }
 0x28f   : > { %p1121_p12 = pnand %p1120_p8, %p1114_p13 }
 0x291   : > { %1124 = shalt.err (!%p1121_p12)
}
 0x292   : > { %s1125_s3 = scalar_lea.hbm %s1583_s12, 512  ;;  %s1129_s0 = scalar_lea.hbm %s1646_s7, 1024 }
 0x293   : > { %p1126_p11 = scmp.ne.s32.totalorder %s1583_s12, %s1125_s3  ;;  %p1130_p9 = scmp.lt.u32.totalorder %s1583_s12, %s1646_s7 }
 0x294   : > { %p1131_p1 = scmp.lt.u32.totalorder %s1129_s0, %s1125_s3  ;;  %p1133_p7 = scmp.lt.u32.totalorder %s1125_s3, %s1583_s12 }
 0x295   : > { %p1127_p0 = pnand %p1126_p11, %p1365_p10 }
 0x296   : > { %p1132_p2 = por %p1131_p1, %p1130_p9 }
 0x297   : > { %p1128_p5 = pneg %p1127_p0 }
 0x298   : > { %p1134_p3 = por %p1133_p7, %p1132_p2 }
 0x29a   : > { %p1135_p13 = pnand %p1134_p3, %p1128_p5 }
 0x29c   : > { %1138 = shalt.err (!%p1135_p13)
}
 0x29d   : > { %870 = dma.vmem_to_hbm [thread:$0]  (%p1365_p10), %s1577_s17, 512, %s1583_s12, %s543_s27, %s1227_s18, %s1227_s18, %s1228_s9  }
 0x29e PF: > { %s620_s22 = sand.u32 1, %s1185_s24   ;;  %p1671_p4 = scmp.ne.s32.totalorder %s1656_s10, 0 }
 0x29f   : > { %p1672_p6 = scmp.ge.s32.totalorder %s1205_s29, 2  ;;  %s621_s1 = scalar_lea.sflag [#allocation4], %s620_s22 }
 0x2a1   : > { %p884_p8 = pnand %p1672_p6, %p1671_p4 }
 0x2a3   : > { %1172 = dma.done.wait (!%p884_p8), %s621_s1, 128  }
 0x2a4   : > { %1174 = vsyncadd (!%p884_p8), %s621_s1, 4294967168  ;;  %s1673_s21 = sadd.s32 4294967294, %s1205_s29  }
 0x2a5   : > { %s629_s20 = sand.u32 1, %s1673_s21  }
 0x2a6   : > { %s630_s30 = scalar_lea.sflag [#allocation9], %s629_s20 }
 0x2a7   : > { %1176 = dma.done.wait (!%p884_p8), %s630_s30, 1024  }
 0x2a8   : > { %1178 = vsyncadd (!%p884_p8), %s630_s30, 4294966272  ;;  %s648_s15 = scalar_lea.sflag [#allocation12], %s620_s22 }
 0x2a9   : > { %1180 = dma.done.wait (!%p884_p8), %s648_s15, 512  }
 0x2aa   : > { %1182 = vsyncadd (!%p884_p8), %s648_s15, 4294966784  ;;  %s31_s29 = sadd.s32 1, %s1205_s29   ;;  %s1674_s10 = sld [smem:[#allocation18_spill]] }
 0x2ab   : > { %p28_p10 = scmp.ge.s32.totalorder %s31_s29, 4   ;;  %s1675_s24 = smov %s1189_s25 }
 0x2ac   : > { %s1676_s25 = smov %s1193_s26  ;;  %s1677_s26 = smov %s1374_s23 }
 0x2ad   : > { %s1678_s27 = smov %s1201_s28  ;;  %30 = sbr.rel (!%p28_p10) target bundleno = 15 (0xf), region = 143 }
 0x2b0   : > { %s1679_s28 = smov %s1674_s10 }
 0x2b4   :  { %653 = vsyncpa [#allocation3], 1 }
 0x2b5   :  { %655 = vsyncpa [#allocation3 + $0x1], 1 }
 0x2b6   :  { %656 = vsyncpa [#allocation6], 1 }
 0x2b7   :  { %657 = vsyncpa [#allocation4], 1 }
 0x2b8   :  { %659 = vsyncpa [#allocation4 + $0x1], 1 }
 0x2b9   :  { %660 = vsyncpa [#allocation9], 1 }
 0x2ba   :  { %662 = vsyncpa [#allocation9 + $0x1], 1 }
 0x2bb   :  { %663 = vsyncpa [#allocation12], 1 }
 0x2bc   :  { %665 = vsyncpa [#allocation12 + $0x1], 1 }

</bundles_post_ra>
